<compile_context>
chip_gen: v7x
topology: tpu7x:2x2x1
jax: 0.10.0
libtpu: 0.0.40
codegen_flags: <defaults>
</compile_context>

<pallas_src>
import functools
import math

import numpy as np
import jax
import jax.numpy as jnp
from jax.experimental import pallas as pl
from jax.experimental.pallas import tpu as pltpu


# ---------------------------------------------------------------------------
# Static mesh construction (deterministic function of n_bins, r, bound).
# ---------------------------------------------------------------------------
def _make_mesh(n_bins, r, bound):
    m = n_bins / 2.0
    x1l = bound * (r - 1.0) / (r ** m - 1.0)
    index = np.arange(0, n_bins + 1, dtype=np.float64).reshape(-1, 1) - m
    xr = np.where(index >= 0,
                  (1.0 - np.power(r, index)) / (1.0 - r),
                  (1.0 - np.power(r, np.abs(index))) / (1.0 - r))
    xr = np.where(index >= 0, x1l * xr, -x1l * xr)
    xr = (xr + bound) / 2.0 / bound
    x1l_norm = x1l / 2.0 / bound
    mesh = np.concatenate(
        [np.array([[0.0]]), xr[1:-1, :1], np.array([[1.0]])], axis=0)
    elmt = mesh[1:, 0] - mesh[:-1, 0]                       # (n_bins,)
    return mesh[:, 0].astype(np.float32), elmt.astype(np.float32), float(x1l_norm)


# ---------------------------------------------------------------------------
# Parameter-only pdf normalization (PyTorch _pdf_normalize) — done in wrapper.
# ---------------------------------------------------------------------------
def _normalize_pdf(p, elmt_np, n_bins):
    D = p.shape[1]
    elmt = jnp.asarray(elmt_np, jnp.float32).reshape(-1, 1)     # (n_bins, 1)
    exp_p = jnp.exp(p)                                          # (n_bins-1, D)
    px = exp_p * (elmt[:-1] + elmt[1:]) / 2.0
    norm = (1.0 - elmt[0]) / jnp.sum(px, axis=0, keepdims=True)  # (1, D)
    px = norm * exp_p
    ones = jnp.ones((1, D), jnp.float32)
    pdf = jnp.concatenate([ones, px, ones], axis=0)             # (n_bins+1, D)
    cell = (pdf[:-1] + pdf[1:]) / 2.0 * elmt                     # (n_bins, D)
    csum = jnp.cumsum(cell, axis=0)
    f_ref = jnp.concatenate(
        [jnp.zeros((1, D), jnp.float32), csum[:n_bins - 1]], axis=0)  # (n_bins, D)
    return pdf, f_ref


# ---------------------------------------------------------------------------
# Pallas kernel: per-tile quadratic-CDF evaluation + logdet reduction.
# ---------------------------------------------------------------------------
def _cdf_fwd_kernel(x_ref, pdf_ref, fref_ref, y_ref, logdet_ref, *,
                    n_bins, r, bound, x1l, mesh, elmt):
    x = x_ref[...].astype(jnp.float32)                       # (TB, D)
    xs = (x + bound) * (0.5 / bound)                          # normalize to [0,1]
    d = xs - 0.5

    # Closed-form bin index on the geometric mesh.
    m_f = jnp.floor(jnp.log(jnp.abs(d) * ((r - 1.0) / x1l) + 1.0) *
                    (1.0 / math.log(r)))
    half = 0.5 * n_bins
    k_f = jnp.where(d >= 0.0, half + m_f, half - m_f - 1.0)
    cover = jnp.logical_and(k_f >= 0.0, k_f <= float(n_bins - 1))
    k = jnp.clip(k_f, 0.0, float(n_bins - 1)).astype(jnp.int32)

    zeros = jnp.zeros_like(xs)
    v1 = zeros
    v2 = zeros
    f_pre = zeros
    mesh_k = zeros
    h = jnp.ones_like(xs)
    # Unrolled select loop over the (small, static) bin count replaces the
    # per-column torch.gather; mesh / elmt entries are baked-in Python floats.
    for b in range(n_bins):
        sel = k == b
        v1 = jnp.where(sel, pdf_ref[b:b + 1, :], v1)
        v2 = jnp.where(sel, pdf_ref[b + 1:b + 2, :], v2)
        f_pre = jnp.where(sel, fref_ref[b:b + 1, :], f_pre)
        mesh_k = jnp.where(sel, mesh[b], mesh_k)
        h = jnp.where(sel, elmt[b], h)

    xmodi = xs - mesh_k
    slope = (v2 - v1) / h
    y_n = jnp.where(cover, f_pre + 0.5 * xmodi * xmodi * slope + xmodi * v1, xs)
    deriv = jnp.where(cover, xmodi * slope + v1, 1.0)

    y_ref[...] = (y_n * (2.0 * bound) - bound).astype(y_ref.dtype)
    logdet_ref[...] = jnp.sum(jnp.log(deriv), axis=-1,
                              keepdims=True).astype(logdet_ref.dtype)


def _choose_tile(batch):
    # Largest batch tile <= 512 rows that divides the batch and is a multiple
    # of 8 (sublane-aligned); fall back to a whole-batch block otherwise.
    for tb in (512, 256, 128, 64, 32, 16, 8):
        if batch % tb == 0:
            return tb
    return batch


# ---------------------------------------------------------------------------
# Public forward: CDF_quadratic.forward(x) -> (y, logdet)
# ---------------------------------------------------------------------------
def cdf_quadratic_forward(x, p, *, n_bins, r=1.2, bound=50.0):
    B, D = x.shape
    mesh_np, elmt_np, x1l = _make_mesh(n_bins, r, bound)
    pdf, f_ref = _normalize_pdf(p, elmt_np, n_bins)

    tb = _choose_tile(B)
    grid = (B // tb,)

    kernel = functools.partial(
        _cdf_fwd_kernel,
        n_bins=n_bins, r=float(r), bound=float(bound), x1l=x1l,
        mesh=tuple(float(v) for v in mesh_np),
        elmt=tuple(float(v) for v in elmt_np))

    y, logdet = pl.pallas_call(
        kernel,
        out_shape=(
            jax.ShapeDtypeStruct((B, D), x.dtype),
            jax.ShapeDtypeStruct((B, 1), jnp.float32),
        ),
        grid_spec=pltpu.PrefetchScalarGridSpec(
            num_scalar_prefetch=0,
            grid=grid,
            in_specs=[
                pl.BlockSpec((tb, D), lambda i: (i, 0)),            # x tile
                pl.BlockSpec((n_bins + 1, D), lambda i: (0, 0)),    # pdf (resident)
                pl.BlockSpec((n_bins, D), lambda i: (0, 0)),        # F_ref (resident)
            ],
            out_specs=(
                pl.BlockSpec((tb, D), lambda i: (i, 0)),            # y tile (lane-dense)
                pl.BlockSpec((tb, 1), lambda i: (i, 0)),            # per-row logdet
            ),
        ),
        compiler_params=pltpu.CompilerParams(
            dimension_semantics=("parallel",)),
    )(x, pdf, f_ref)
    return y, logdet[:, 0]


# ---------------------------------------------------------------------------
# Pure-JAX reference (mirrors the PyTorch forward exactly).
# ---------------------------------------------------------------------------
def cdf_quadratic_ref(x, p, n_bins, r, bound):
    mesh_np, elmt_np, x1l = _make_mesh(n_bins, r, bound)
    pdf, f_ref = _normalize_pdf(p, elmt_np, n_bins)
    mesh_j = jnp.asarray(mesh_np)
    elmt_j = jnp.asarray(elmt_np)

    xs = (x + bound) / 2.0 / bound
    d = xs - 0.5
    m_f = jnp.floor(jnp.log(jnp.abs(d) * (r - 1.0) / x1l + 1.0) / np.log(r))
    k_f = jnp.where(jnp.sign(d) >= 0, n_bins / 2 + m_f, n_bins / 2 - m_f - 1.0)
    k_i = k_f.astype(jnp.int32)
    cover = (k_i * (k_i - (n_bins - 1)) <= 0)
    k = jnp.clip(k_i, 0, n_bins - 1)

    v1 = jnp.take_along_axis(pdf, k, axis=0)
    v2 = jnp.take_along_axis(pdf, k + 1, axis=0)
    f_pre = jnp.take_along_axis(f_ref, k, axis=0)
    mesh_k = mesh_j[k]
    h = elmt_j[k]

    xmodi = xs - mesh_k
    y = jnp.where(cover, f_pre + xmodi ** 2 / 2.0 * (v2 - v1) / h + xmodi * v1, xs)
    deriv = jnp.where(cover, xmodi * (v2 - v1) / h + v1, jnp.ones_like(xs))
    logdet = jnp.sum(jnp.log(deriv), axis=-1)
    return y * 2.0 * bound - bound, logdet


if __name__ == "__main__":
    n_bins, input_dim, batch = 16, 32, 8
    r, bound = 1.2, 50.0

    key = jax.random.PRNGKey(0)
    kx, kp = jax.random.split(key)
    x = jax.random.uniform(kx, (batch, input_dim), dtype=jnp.float32,
                           minval=-0.9 * bound, maxval=0.9 * bound)
    # A couple of out-of-domain values exercise the cover == 0 (identity) path.
    x = x.at[0, 0].set(1.3 * bound).at[1, 1].set(-1.3 * bound)
    # __init__ creates p = zeros; small random logits exercise a non-trivial pdf.
    p = 0.1 * jax.random.normal(kp, (n_bins - 1, input_dim), dtype=jnp.float32)

    y, logdet = cdf_quadratic_forward(x, p, n_bins=n_bins, r=r, bound=bound)
    jax.block_until_ready((y, logdet))

    y_ref, logdet_ref = cdf_quadratic_ref(x, p, n_bins, r, bound)
    assert jnp.allclose(y, y_ref, atol=2e-4, rtol=2e-4), \
        float(jnp.max(jnp.abs(y - y_ref)))
    assert jnp.allclose(logdet, logdet_ref, atol=2e-4, rtol=2e-4), \
        float(jnp.max(jnp.abs(logdet - logdet_ref)))

    print("KERNEL_OK")
</pallas_src>

<mosaic_0001>
module attributes {stable_mosaic.version = 11 : i64} {
  func.func @_cdf_fwd_kernel(%arg0: i32, %arg1: memref<8x32xf32, #tpu.memory_space<vmem>>, %arg2: memref<17x32xf32, #tpu.memory_space<vmem>>, %arg3: memref<16x32xf32, #tpu.memory_space<vmem>>, %arg4: memref<8x32xf32, #tpu.memory_space<vmem>>, %arg5: memref<8x1xf32, #tpu.memory_space<vmem>>) attributes {dimension_semantics = [#tpu.dimension_semantics<parallel>], iteration_bounds = array<i64: 1>, scalar_prefetch = 0 : i64, scratch_operands = 0 : i64, tpu.core_type = #tpu.core_type<tc>, window_params = [{transform_indices = @transform_0, window_bounds = array<i64: 8, 32>}, {pipeline_mode = #tpu.pipeline_mode<synchronous>, transform_indices = @transform_1, window_bounds = array<i64: 17, 32>}, {pipeline_mode = #tpu.pipeline_mode<synchronous>, transform_indices = @transform_2, window_bounds = array<i64: 16, 32>}, {transform_indices = @transform_3, window_bounds = array<i64: 8, 32>}, {transform_indices = @transform_4, window_bounds = array<i64: 8, 1>}]} {
    %c0 = arith.constant 0 : index
    %c0_0 = arith.constant 0 : index
    %0 = vector.load %arg1[%c0, %c0_0] : memref<8x32xf32, #tpu.memory_space<vmem>>, vector<8x32xf32>
    %cst = arith.constant 5.000000e+01 : f32
    %1 = vector.broadcast %cst : f32 to vector<8x32xf32>
    %2 = arith.addf %0, %1 : vector<8x32xf32>
    %cst_1 = arith.constant 0.00999999977 : f32
    %3 = vector.broadcast %cst_1 : f32 to vector<8x32xf32>
    %4 = arith.mulf %2, %3 : vector<8x32xf32>
    %cst_2 = arith.constant 5.000000e-01 : f32
    %5 = vector.broadcast %cst_2 : f32 to vector<8x32xf32>
    %6 = arith.subf %4, %5 : vector<8x32xf32>
    %7 = math.absf %6 : vector<8x32xf32>
    %cst_3 = arith.constant 6.59963369 : f32
    %8 = vector.broadcast %cst_3 : f32 to vector<8x32xf32>
    %9 = arith.mulf %7, %8 : vector<8x32xf32>
    %cst_4 = arith.constant 1.000000e+00 : f32
    %10 = vector.broadcast %cst_4 : f32 to vector<8x32xf32>
    %11 = arith.addf %9, %10 : vector<8x32xf32>
    %12 = math.log %11 : vector<8x32xf32>
    %cst_5 = arith.constant 5.48481512 : f32
    %13 = vector.broadcast %cst_5 : f32 to vector<8x32xf32>
    %14 = arith.mulf %12, %13 : vector<8x32xf32>
    %15 = math.floor %14 : vector<8x32xf32>
    %cst_6 = arith.constant 0.000000e+00 : f32
    %16 = vector.broadcast %cst_6 : f32 to vector<8x32xf32>
    %17 = arith.cmpf oge, %6, %16 : vector<8x32xf32>
    %cst_7 = arith.constant 8.000000e+00 : f32
    %18 = vector.broadcast %cst_7 : f32 to vector<8x32xf32>
    %19 = arith.addf %18, %15 : vector<8x32xf32>
    %cst_8 = arith.constant 8.000000e+00 : f32
    %20 = vector.broadcast %cst_8 : f32 to vector<8x32xf32>
    %21 = arith.subf %20, %15 : vector<8x32xf32>
    %cst_9 = arith.constant 1.000000e+00 : f32
    %22 = vector.broadcast %cst_9 : f32 to vector<8x32xf32>
    %23 = arith.subf %21, %22 : vector<8x32xf32>
    %24 = arith.select %17, %19, %23 : vector<8x32xi1>, vector<8x32xf32>
    %cst_10 = arith.constant 0.000000e+00 : f32
    %25 = vector.broadcast %cst_10 : f32 to vector<8x32xf32>
    %26 = arith.cmpf oge, %24, %25 : vector<8x32xf32>
    %cst_11 = arith.constant 1.500000e+01 : f32
    %27 = vector.broadcast %cst_11 : f32 to vector<8x32xf32>
    %28 = arith.cmpf ole, %24, %27 : vector<8x32xf32>
    %29 = arith.andi %26, %28 : vector<8x32xi1>
    %cst_12 = arith.constant 0.000000e+00 : f32
    %cst_13 = arith.constant 1.500000e+01 : f32
    %30 = vector.broadcast %cst_12 : f32 to vector<8x32xf32>
    %31 = arith.maximumf %30, %24 : vector<8x32xf32>
    %32 = vector.broadcast %cst_13 : f32 to vector<8x32xf32>
    %33 = arith.minimumf %32, %31 : vector<8x32xf32>
    %34 = arith.fptosi %33 : vector<8x32xf32> to vector<8x32xi32>
    %cst_14 = arith.constant 0.000000e+00 : f32
    %35 = vector.broadcast %cst_14 : f32 to vector<8x32xf32>
    %cst_15 = arith.constant 1.000000e+00 : f32
    %36 = vector.broadcast %cst_15 : f32 to vector<8x32xf32>
    %c0_i32 = arith.constant 0 : i32
    %37 = vector.broadcast %c0_i32 : i32 to vector<8x32xi32>
    %38 = arith.cmpi eq, %34, %37 : vector<8x32xi32>
    %c0_16 = arith.constant 0 : index
    %c0_17 = arith.constant 0 : index
    %39 = vector.load %arg2[%c0_16, %c0_17] : memref<17x32xf32, #tpu.memory_space<vmem>>, vector<1x32xf32>
    %40 = vector.shape_cast %39 : vector<1x32xf32> to vector<1x32xf32>
    %41 = vector.broadcast %40 : vector<1x32xf32> to vector<8x32xf32>
    %42 = arith.select %38, %41, %35 : vector<8x32xi1>, vector<8x32xf32>
    %c1 = arith.constant 1 : index
    %c0_18 = arith.constant 0 : index
    %43 = vector.load %arg2[%c1, %c0_18] : memref<17x32xf32, #tpu.memory_space<vmem>>, vector<1x32xf32>
    %44 = vector.shape_cast %43 : vector<1x32xf32> to vector<1x32xf32>
    %45 = vector.broadcast %44 : vector<1x32xf32> to vector<8x32xf32>
    %46 = arith.select %38, %45, %35 : vector<8x32xi1>, vector<8x32xf32>
    %c0_19 = arith.constant 0 : index
    %c0_20 = arith.constant 0 : index
    %47 = vector.load %arg3[%c0_19, %c0_20] : memref<16x32xf32, #tpu.memory_space<vmem>>, vector<1x32xf32>
    %48 = vector.shape_cast %47 : vector<1x32xf32> to vector<1x32xf32>
    %49 = vector.broadcast %48 : vector<1x32xf32> to vector<8x32xf32>
    %50 = arith.select %38, %49, %35 : vector<8x32xi1>, vector<8x32xf32>
    %cst_21 = arith.constant 0.000000e+00 : f32
    %51 = vector.broadcast %cst_21 : f32 to vector<8x32xf32>
    %52 = arith.select %38, %51, %35 : vector<8x32xi1>, vector<8x32xf32>
    %cst_22 = arith.constant 0.108587258 : f32
    %53 = vector.broadcast %cst_22 : f32 to vector<8x32xf32>
    %54 = arith.select %38, %53, %36 : vector<8x32xi1>, vector<8x32xf32>
    %c1_i32 = arith.constant 1 : i32
    %55 = vector.broadcast %c1_i32 : i32 to vector<8x32xi32>
    %56 = arith.cmpi eq, %34, %55 : vector<8x32xi32>
    %c1_23 = arith.constant 1 : index
    %c0_24 = arith.constant 0 : index
    %57 = vector.load %arg2[%c1_23, %c0_24] : memref<17x32xf32, #tpu.memory_space<vmem>>, vector<1x32xf32>
    %58 = vector.shape_cast %57 : vector<1x32xf32> to vector<1x32xf32>
    %59 = vector.broadcast %58 : vector<1x32xf32> to vector<8x32xf32>
    %60 = arith.select %56, %59, %42 : vector<8x32xi1>, vector<8x32xf32>
    %c2 = arith.constant 2 : index
    %c0_25 = arith.constant 0 : index
    %61 = vector.load %arg2[%c2, %c0_25] : memref<17x32xf32, #tpu.memory_space<vmem>>, vector<1x32xf32>
    %62 = vector.shape_cast %61 : vector<1x32xf32> to vector<1x32xf32>
    %63 = vector.broadcast %62 : vector<1x32xf32> to vector<8x32xf32>
    %64 = arith.select %56, %63, %46 : vector<8x32xi1>, vector<8x32xf32>
    %c1_26 = arith.constant 1 : index
    %c0_27 = arith.constant 0 : index
    %65 = vector.load %arg3[%c1_26, %c0_27] : memref<16x32xf32, #tpu.memory_space<vmem>>, vector<1x32xf32>
    %66 = vector.shape_cast %65 : vector<1x32xf32> to vector<1x32xf32>
    %67 = vector.broadcast %66 : vector<1x32xf32> to vector<8x32xf32>
    %68 = arith.select %56, %67, %50 : vector<8x32xi1>, vector<8x32xf32>
    %cst_28 = arith.constant 0.108587258 : f32
    %69 = vector.broadcast %cst_28 : f32 to vector<8x32xf32>
    %70 = arith.select %56, %69, %52 : vector<8x32xi1>, vector<8x32xf32>
    %cst_29 = arith.constant 0.09048938 : f32
    %71 = vector.broadcast %cst_29 : f32 to vector<8x32xf32>
    %72 = arith.select %56, %71, %54 : vector<8x32xi1>, vector<8x32xf32>
    %c2_i32 = arith.constant 2 : i32
    %73 = vector.broadcast %c2_i32 : i32 to vector<8x32xi32>
    %74 = arith.cmpi eq, %34, %73 : vector<8x32xi32>
    %c2_30 = arith.constant 2 : index
    %c0_31 = arith.constant 0 : index
    %75 = vector.load %arg2[%c2_30, %c0_31] : memref<17x32xf32, #tpu.memory_space<vmem>>, vector<1x32xf32>
    %76 = vector.shape_cast %75 : vector<1x32xf32> to vector<1x32xf32>
    %77 = vector.broadcast %76 : vector<1x32xf32> to vector<8x32xf32>
    %78 = arith.select %74, %77, %60 : vector<8x32xi1>, vector<8x32xf32>
    %c3 = arith.constant 3 : index
    %c0_32 = arith.constant 0 : index
    %79 = vector.load %arg2[%c3, %c0_32] : memref<17x32xf32, #tpu.memory_space<vmem>>, vector<1x32xf32>
    %80 = vector.shape_cast %79 : vector<1x32xf32> to vector<1x32xf32>
    %81 = vector.broadcast %80 : vector<1x32xf32> to vector<8x32xf32>
    %82 = arith.select %74, %81, %64 : vector<8x32xi1>, vector<8x32xf32>
    %c2_33 = arith.constant 2 : index
    %c0_34 = arith.constant 0 : index
    %83 = vector.load %arg3[%c2_33, %c0_34] : memref<16x32xf32, #tpu.memory_space<vmem>>, vector<1x32xf32>
    %84 = vector.shape_cast %83 : vector<1x32xf32> to vector<1x32xf32>
    %85 = vector.broadcast %84 : vector<1x32xf32> to vector<8x32xf32>
    %86 = arith.select %74, %85, %68 : vector<8x32xi1>, vector<8x32xf32>
    %cst_35 = arith.constant 0.199076638 : f32
    %87 = vector.broadcast %cst_35 : f32 to vector<8x32xf32>
    %88 = arith.select %74, %87, %70 : vector<8x32xi1>, vector<8x32xf32>
    %cst_36 = arith.constant 0.075407818 : f32
    %89 = vector.broadcast %cst_36 : f32 to vector<8x32xf32>
    %90 = arith.select %74, %89, %72 : vector<8x32xi1>, vector<8x32xf32>
    %c3_i32 = arith.constant 3 : i32
    %91 = vector.broadcast %c3_i32 : i32 to vector<8x32xi32>
    %92 = arith.cmpi eq, %34, %91 : vector<8x32xi32>
    %c3_37 = arith.constant 3 : index
    %c0_38 = arith.constant 0 : index
    %93 = vector.load %arg2[%c3_37, %c0_38] : memref<17x32xf32, #tpu.memory_space<vmem>>, vector<1x32xf32>
    %94 = vector.shape_cast %93 : vector<1x32xf32> to vector<1x32xf32>
    %95 = vector.broadcast %94 : vector<1x32xf32> to vector<8x32xf32>
    %96 = arith.select %92, %95, %78 : vector<8x32xi1>, vector<8x32xf32>
    %c4 = arith.constant 4 : index
    %c0_39 = arith.constant 0 : index
    %97 = vector.load %arg2[%c4, %c0_39] : memref<17x32xf32, #tpu.memory_space<vmem>>, vector<1x32xf32>
    %98 = vector.shape_cast %97 : vector<1x32xf32> to vector<1x32xf32>
    %99 = vector.broadcast %98 : vector<1x32xf32> to vector<8x32xf32>
    %100 = arith.select %92, %99, %82 : vector<8x32xi1>, vector<8x32xf32>
    %c3_40 = arith.constant 3 : index
    %c0_41 = arith.constant 0 : index
    %101 = vector.load %arg3[%c3_40, %c0_41] : memref<16x32xf32, #tpu.memory_space<vmem>>, vector<1x32xf32>
    %102 = vector.shape_cast %101 : vector<1x32xf32> to vector<1x32xf32>
    %103 = vector.broadcast %102 : vector<1x32xf32> to vector<8x32xf32>
    %104 = arith.select %92, %103, %86 : vector<8x32xi1>, vector<8x32xf32>
    %cst_42 = arith.constant 0.274484456 : f32
    %105 = vector.broadcast %cst_42 : f32 to vector<8x32xf32>
    %106 = arith.select %92, %105, %88 : vector<8x32xi1>, vector<8x32xf32>
    %cst_43 = arith.constant 0.0628398508 : f32
    %107 = vector.broadcast %cst_43 : f32 to vector<8x32xf32>
    %108 = arith.select %92, %107, %90 : vector<8x32xi1>, vector<8x32xf32>
    %c4_i32 = arith.constant 4 : i32
    %109 = vector.broadcast %c4_i32 : i32 to vector<8x32xi32>
    %110 = arith.cmpi eq, %34, %109 : vector<8x32xi32>
    %c4_44 = arith.constant 4 : index
    %c0_45 = arith.constant 0 : index
    %111 = vector.load %arg2[%c4_44, %c0_45] : memref<17x32xf32, #tpu.memory_space<vmem>>, vector<1x32xf32>
    %112 = vector.shape_cast %111 : vector<1x32xf32> to vector<1x32xf32>
    %113 = vector.broadcast %112 : vector<1x32xf32> to vector<8x32xf32>
    %114 = arith.select %110, %113, %96 : vector<8x32xi1>, vector<8x32xf32>
    %c5 = arith.constant 5 : index
    %c0_46 = arith.constant 0 : index
    %115 = vector.load %arg2[%c5, %c0_46] : memref<17x32xf32, #tpu.memory_space<vmem>>, vector<1x32xf32>
    %116 = vector.shape_cast %115 : vector<1x32xf32> to vector<1x32xf32>
    %117 = vector.broadcast %116 : vector<1x32xf32> to vector<8x32xf32>
    %118 = arith.select %110, %117, %100 : vector<8x32xi1>, vector<8x32xf32>
    %c4_47 = arith.constant 4 : index
    %c0_48 = arith.constant 0 : index
    %119 = vector.load %arg3[%c4_47, %c0_48] : memref<16x32xf32, #tpu.memory_space<vmem>>, vector<1x32xf32>
    %120 = vector.shape_cast %119 : vector<1x32xf32> to vector<1x32xf32>
    %121 = vector.broadcast %120 : vector<1x32xf32> to vector<8x32xf32>
    %122 = arith.select %110, %121, %104 : vector<8x32xi1>, vector<8x32xf32>
    %cst_49 = arith.constant 0.337324321 : f32
    %123 = vector.broadcast %cst_49 : f32 to vector<8x32xf32>
    %124 = arith.select %110, %123, %106 : vector<8x32xi1>, vector<8x32xf32>
    %cst_50 = arith.constant 0.0523665398 : f32
    %125 = vector.broadcast %cst_50 : f32 to vector<8x32xf32>
    %126 = arith.select %110, %125, %108 : vector<8x32xi1>, vector<8x32xf32>
    %c5_i32 = arith.constant 5 : i32
    %127 = vector.broadcast %c5_i32 : i32 to vector<8x32xi32>
    %128 = arith.cmpi eq, %34, %127 : vector<8x32xi32>
    %c5_51 = arith.constant 5 : index
    %c0_52 = arith.constant 0 : index
    %129 = vector.load %arg2[%c5_51, %c0_52] : memref<17x32xf32, #tpu.memory_space<vmem>>, vector<1x32xf32>
    %130 = vector.shape_cast %129 : vector<1x32xf32> to vector<1x32xf32>
    %131 = vector.broadcast %130 : vector<1x32xf32> to vector<8x32xf32>
    %132 = arith.select %128, %131, %114 : vector<8x32xi1>, vector<8x32xf32>
    %c6 = arith.constant 6 : index
    %c0_53 = arith.constant 0 : index
    %133 = vector.load %arg2[%c6, %c0_53] : memref<17x32xf32, #tpu.memory_space<vmem>>, vector<1x32xf32>
    %134 = vector.shape_cast %133 : vector<1x32xf32> to vector<1x32xf32>
    %135 = vector.broadcast %134 : vector<1x32xf32> to vector<8x32xf32>
    %136 = arith.select %128, %135, %118 : vector<8x32xi1>, vector<8x32xf32>
    %c5_54 = arith.constant 5 : index
    %c0_55 = arith.constant 0 : index
    %137 = vector.load %arg3[%c5_54, %c0_55] : memref<16x32xf32, #tpu.memory_space<vmem>>, vector<1x32xf32>
    %138 = vector.shape_cast %137 : vector<1x32xf32> to vector<1x32xf32>
    %139 = vector.broadcast %138 : vector<1x32xf32> to vector<8x32xf32>
    %140 = arith.select %128, %139, %122 : vector<8x32xi1>, vector<8x32xf32>
    %cst_56 = arith.constant 0.389690846 : f32
    %141 = vector.broadcast %cst_56 : f32 to vector<8x32xf32>
    %142 = arith.select %128, %141, %124 : vector<8x32xi1>, vector<8x32xf32>
    %cst_57 = arith.constant 0.0436387844 : f32
    %143 = vector.broadcast %cst_57 : f32 to vector<8x32xf32>
    %144 = arith.select %128, %143, %126 : vector<8x32xi1>, vector<8x32xf32>
    %c6_i32 = arith.constant 6 : i32
    %145 = vector.broadcast %c6_i32 : i32 to vector<8x32xi32>
    %146 = arith.cmpi eq, %34, %145 : vector<8x32xi32>
    %c6_58 = arith.constant 6 : index
    %c0_59 = arith.constant 0 : index
    %147 = vector.load %arg2[%c6_58, %c0_59] : memref<17x32xf32, #tpu.memory_space<vmem>>, vector<1x32xf32>
    %148 = vector.shape_cast %147 : vector<1x32xf32> to vector<1x32xf32>
    %149 = vector.broadcast %148 : vector<1x32xf32> to vector<8x32xf32>
    %150 = arith.select %146, %149, %132 : vector<8x32xi1>, vector<8x32xf32>
    %c7 = arith.constant 7 : index
    %c0_60 = arith.constant 0 : index
    %151 = vector.load %arg2[%c7, %c0_60] : memref<17x32xf32, #tpu.memory_space<vmem>>, vector<1x32xf32>
    %152 = vector.shape_cast %151 : vector<1x32xf32> to vector<1x32xf32>
    %153 = vector.broadcast %152 : vector<1x32xf32> to vector<8x32xf32>
    %154 = arith.select %146, %153, %136 : vector<8x32xi1>, vector<8x32xf32>
    %c6_61 = arith.constant 6 : index
    %c0_62 = arith.constant 0 : index
    %155 = vector.load %arg3[%c6_61, %c0_62] : memref<16x32xf32, #tpu.memory_space<vmem>>, vector<1x32xf32>
    %156 = vector.shape_cast %155 : vector<1x32xf32> to vector<1x32xf32>
    %157 = vector.broadcast %156 : vector<1x32xf32> to vector<8x32xf32>
    %158 = arith.select %146, %157, %140 : vector<8x32xi1>, vector<8x32xf32>
    %cst_63 = arith.constant 0.433329642 : f32
    %159 = vector.broadcast %cst_63 : f32 to vector<8x32xf32>
    %160 = arith.select %146, %159, %142 : vector<8x32xi1>, vector<8x32xf32>
    %cst_64 = arith.constant 0.0363656543 : f32
    %161 = vector.broadcast %cst_64 : f32 to vector<8x32xf32>
    %162 = arith.select %146, %161, %144 : vector<8x32xi1>, vector<8x32xf32>
    %c7_i32 = arith.constant 7 : i32
    %163 = vector.broadcast %c7_i32 : i32 to vector<8x32xi32>
    %164 = arith.cmpi eq, %34, %163 : vector<8x32xi32>
    %c7_65 = arith.constant 7 : index
    %c0_66 = arith.constant 0 : index
    %165 = vector.load %arg2[%c7_65, %c0_66] : memref<17x32xf32, #tpu.memory_space<vmem>>, vector<1x32xf32>
    %166 = vector.shape_cast %165 : vector<1x32xf32> to vector<1x32xf32>
    %167 = vector.broadcast %166 : vector<1x32xf32> to vector<8x32xf32>
    %168 = arith.select %164, %167, %150 : vector<8x32xi1>, vector<8x32xf32>
    %c8 = arith.constant 8 : index
    %c0_67 = arith.constant 0 : index
    %169 = vector.load %arg2[%c8, %c0_67] : memref<17x32xf32, #tpu.memory_space<vmem>>, vector<1x32xf32>
    %170 = vector.shape_cast %169 : vector<1x32xf32> to vector<1x32xf32>
    %171 = vector.broadcast %170 : vector<1x32xf32> to vector<8x32xf32>
    %172 = arith.select %164, %171, %154 : vector<8x32xi1>, vector<8x32xf32>
    %c7_68 = arith.constant 7 : index
    %c0_69 = arith.constant 0 : index
    %173 = vector.load %arg3[%c7_68, %c0_69] : memref<16x32xf32, #tpu.memory_space<vmem>>, vector<1x32xf32>
    %174 = vector.shape_cast %173 : vector<1x32xf32> to vector<1x32xf32>
    %175 = vector.broadcast %174 : vector<1x32xf32> to vector<8x32xf32>
    %176 = arith.select %164, %175, %158 : vector<8x32xi1>, vector<8x32xf32>
    %cst_70 = arith.constant 0.4696953 : f32
    %177 = vector.broadcast %cst_70 : f32 to vector<8x32xf32>
    %178 = arith.select %164, %177, %160 : vector<8x32xi1>, vector<8x32xf32>
    %cst_71 = arith.constant 0.0303047113 : f32
    %179 = vector.broadcast %cst_71 : f32 to vector<8x32xf32>
    %180 = arith.select %164, %179, %162 : vector<8x32xi1>, vector<8x32xf32>
    %c8_i32 = arith.constant 8 : i32
    %181 = vector.broadcast %c8_i32 : i32 to vector<8x32xi32>
    %182 = arith.cmpi eq, %34, %181 : vector<8x32xi32>
    %c8_72 = arith.constant 8 : index
    %c0_73 = arith.constant 0 : index
    %183 = vector.load %arg2[%c8_72, %c0_73] : memref<17x32xf32, #tpu.memory_space<vmem>>, vector<1x32xf32>
    %184 = vector.shape_cast %183 : vector<1x32xf32> to vector<1x32xf32>
    %185 = vector.broadcast %184 : vector<1x32xf32> to vector<8x32xf32>
    %186 = arith.select %182, %185, %168 : vector<8x32xi1>, vector<8x32xf32>
    %c9 = arith.constant 9 : index
    %c0_74 = arith.constant 0 : index
    %187 = vector.load %arg2[%c9, %c0_74] : memref<17x32xf32, #tpu.memory_space<vmem>>, vector<1x32xf32>
    %188 = vector.shape_cast %187 : vector<1x32xf32> to vector<1x32xf32>
    %189 = vector.broadcast %188 : vector<1x32xf32> to vector<8x32xf32>
    %190 = arith.select %182, %189, %172 : vector<8x32xi1>, vector<8x32xf32>
    %c8_75 = arith.constant 8 : index
    %c0_76 = arith.constant 0 : index
    %191 = vector.load %arg3[%c8_75, %c0_76] : memref<16x32xf32, #tpu.memory_space<vmem>>, vector<1x32xf32>
    %192 = vector.shape_cast %191 : vector<1x32xf32> to vector<1x32xf32>
    %193 = vector.broadcast %192 : vector<1x32xf32> to vector<8x32xf32>
    %194 = arith.select %182, %193, %176 : vector<8x32xi1>, vector<8x32xf32>
    %cst_77 = arith.constant 5.000000e-01 : f32
    %195 = vector.broadcast %cst_77 : f32 to vector<8x32xf32>
    %196 = arith.select %182, %195, %178 : vector<8x32xi1>, vector<8x32xf32>
    %cst_78 = arith.constant 0.0303047113 : f32
    %197 = vector.broadcast %cst_78 : f32 to vector<8x32xf32>
    %198 = arith.select %182, %197, %180 : vector<8x32xi1>, vector<8x32xf32>
    %c9_i32 = arith.constant 9 : i32
    %199 = vector.broadcast %c9_i32 : i32 to vector<8x32xi32>
    %200 = arith.cmpi eq, %34, %199 : vector<8x32xi32>
    %c9_79 = arith.constant 9 : index
    %c0_80 = arith.constant 0 : index
    %201 = vector.load %arg2[%c9_79, %c0_80] : memref<17x32xf32, #tpu.memory_space<vmem>>, vector<1x32xf32>
    %202 = vector.shape_cast %201 : vector<1x32xf32> to vector<1x32xf32>
    %203 = vector.broadcast %202 : vector<1x32xf32> to vector<8x32xf32>
    %204 = arith.select %200, %203, %186 : vector<8x32xi1>, vector<8x32xf32>
    %c10 = arith.constant 10 : index
    %c0_81 = arith.constant 0 : index
    %205 = vector.load %arg2[%c10, %c0_81] : memref<17x32xf32, #tpu.memory_space<vmem>>, vector<1x32xf32>
    %206 = vector.shape_cast %205 : vector<1x32xf32> to vector<1x32xf32>
    %207 = vector.broadcast %206 : vector<1x32xf32> to vector<8x32xf32>
    %208 = arith.select %200, %207, %190 : vector<8x32xi1>, vector<8x32xf32>
    %c9_82 = arith.constant 9 : index
    %c0_83 = arith.constant 0 : index
    %209 = vector.load %arg3[%c9_82, %c0_83] : memref<16x32xf32, #tpu.memory_space<vmem>>, vector<1x32xf32>
    %210 = vector.shape_cast %209 : vector<1x32xf32> to vector<1x32xf32>
    %211 = vector.broadcast %210 : vector<1x32xf32> to vector<8x32xf32>
    %212 = arith.select %200, %211, %194 : vector<8x32xi1>, vector<8x32xf32>
    %cst_84 = arith.constant 0.53030473 : f32
    %213 = vector.broadcast %cst_84 : f32 to vector<8x32xf32>
    %214 = arith.select %200, %213, %196 : vector<8x32xi1>, vector<8x32xf32>
    %cst_85 = arith.constant 0.0363656543 : f32
    %215 = vector.broadcast %cst_85 : f32 to vector<8x32xf32>
    %216 = arith.select %200, %215, %198 : vector<8x32xi1>, vector<8x32xf32>
    %c10_i32 = arith.constant 10 : i32
    %217 = vector.broadcast %c10_i32 : i32 to vector<8x32xi32>
    %218 = arith.cmpi eq, %34, %217 : vector<8x32xi32>
    %c10_86 = arith.constant 10 : index
    %c0_87 = arith.constant 0 : index
    %219 = vector.load %arg2[%c10_86, %c0_87] : memref<17x32xf32, #tpu.memory_space<vmem>>, vector<1x32xf32>
    %220 = vector.shape_cast %219 : vector<1x32xf32> to vector<1x32xf32>
    %221 = vector.broadcast %220 : vector<1x32xf32> to vector<8x32xf32>
    %222 = arith.select %218, %221, %204 : vector<8x32xi1>, vector<8x32xf32>
    %c11 = arith.constant 11 : index
    %c0_88 = arith.constant 0 : index
    %223 = vector.load %arg2[%c11, %c0_88] : memref<17x32xf32, #tpu.memory_space<vmem>>, vector<1x32xf32>
    %224 = vector.shape_cast %223 : vector<1x32xf32> to vector<1x32xf32>
    %225 = vector.broadcast %224 : vector<1x32xf32> to vector<8x32xf32>
    %226 = arith.select %218, %225, %208 : vector<8x32xi1>, vector<8x32xf32>
    %c10_89 = arith.constant 10 : index
    %c0_90 = arith.constant 0 : index
    %227 = vector.load %arg3[%c10_89, %c0_90] : memref<16x32xf32, #tpu.memory_space<vmem>>, vector<1x32xf32>
    %228 = vector.shape_cast %227 : vector<1x32xf32> to vector<1x32xf32>
    %229 = vector.broadcast %228 : vector<1x32xf32> to vector<8x32xf32>
    %230 = arith.select %218, %229, %212 : vector<8x32xi1>, vector<8x32xf32>
    %cst_91 = arith.constant 0.566670358 : f32
    %231 = vector.broadcast %cst_91 : f32 to vector<8x32xf32>
    %232 = arith.select %218, %231, %214 : vector<8x32xi1>, vector<8x32xf32>
    %cst_92 = arith.constant 0.0436387844 : f32
    %233 = vector.broadcast %cst_92 : f32 to vector<8x32xf32>
    %234 = arith.select %218, %233, %216 : vector<8x32xi1>, vector<8x32xf32>
    %c11_i32 = arith.constant 11 : i32
    %235 = vector.broadcast %c11_i32 : i32 to vector<8x32xi32>
    %236 = arith.cmpi eq, %34, %235 : vector<8x32xi32>
    %c11_93 = arith.constant 11 : index
    %c0_94 = arith.constant 0 : index
    %237 = vector.load %arg2[%c11_93, %c0_94] : memref<17x32xf32, #tpu.memory_space<vmem>>, vector<1x32xf32>
    %238 = vector.shape_cast %237 : vector<1x32xf32> to vector<1x32xf32>
    %239 = vector.broadcast %238 : vector<1x32xf32> to vector<8x32xf32>
    %240 = arith.select %236, %239, %222 : vector<8x32xi1>, vector<8x32xf32>
    %c12 = arith.constant 12 : index
    %c0_95 = arith.constant 0 : index
    %241 = vector.load %arg2[%c12, %c0_95] : memref<17x32xf32, #tpu.memory_space<vmem>>, vector<1x32xf32>
    %242 = vector.shape_cast %241 : vector<1x32xf32> to vector<1x32xf32>
    %243 = vector.broadcast %242 : vector<1x32xf32> to vector<8x32xf32>
    %244 = arith.select %236, %243, %226 : vector<8x32xi1>, vector<8x32xf32>
    %c11_96 = arith.constant 11 : index
    %c0_97 = arith.constant 0 : index
    %245 = vector.load %arg3[%c11_96, %c0_97] : memref<16x32xf32, #tpu.memory_space<vmem>>, vector<1x32xf32>
    %246 = vector.shape_cast %245 : vector<1x32xf32> to vector<1x32xf32>
    %247 = vector.broadcast %246 : vector<1x32xf32> to vector<8x32xf32>
    %248 = arith.select %236, %247, %230 : vector<8x32xi1>, vector<8x32xf32>
    %cst_98 = arith.constant 0.610309123 : f32
    %249 = vector.broadcast %cst_98 : f32 to vector<8x32xf32>
    %250 = arith.select %236, %249, %232 : vector<8x32xi1>, vector<8x32xf32>
    %cst_99 = arith.constant 0.0523665398 : f32
    %251 = vector.broadcast %cst_99 : f32 to vector<8x32xf32>
    %252 = arith.select %236, %251, %234 : vector<8x32xi1>, vector<8x32xf32>
    %c12_i32 = arith.constant 12 : i32
    %253 = vector.broadcast %c12_i32 : i32 to vector<8x32xi32>
    %254 = arith.cmpi eq, %34, %253 : vector<8x32xi32>
    %c12_100 = arith.constant 12 : index
    %c0_101 = arith.constant 0 : index
    %255 = vector.load %arg2[%c12_100, %c0_101] : memref<17x32xf32, #tpu.memory_space<vmem>>, vector<1x32xf32>
    %256 = vector.shape_cast %255 : vector<1x32xf32> to vector<1x32xf32>
    %257 = vector.broadcast %256 : vector<1x32xf32> to vector<8x32xf32>
    %258 = arith.select %254, %257, %240 : vector<8x32xi1>, vector<8x32xf32>
    %c13 = arith.constant 13 : index
    %c0_102 = arith.constant 0 : index
    %259 = vector.load %arg2[%c13, %c0_102] : memref<17x32xf32, #tpu.memory_space<vmem>>, vector<1x32xf32>
    %260 = vector.shape_cast %259 : vector<1x32xf32> to vector<1x32xf32>
    %261 = vector.broadcast %260 : vector<1x32xf32> to vector<8x32xf32>
    %262 = arith.select %254, %261, %244 : vector<8x32xi1>, vector<8x32xf32>
    %c12_103 = arith.constant 12 : index
    %c0_104 = arith.constant 0 : index
    %263 = vector.load %arg3[%c12_103, %c0_104] : memref<16x32xf32, #tpu.memory_space<vmem>>, vector<1x32xf32>
    %264 = vector.shape_cast %263 : vector<1x32xf32> to vector<1x32xf32>
    %265 = vector.broadcast %264 : vector<1x32xf32> to vector<8x32xf32>
    %266 = arith.select %254, %265, %248 : vector<8x32xi1>, vector<8x32xf32>
    %cst_105 = arith.constant 0.662675678 : f32
    %267 = vector.broadcast %cst_105 : f32 to vector<8x32xf32>
    %268 = arith.select %254, %267, %250 : vector<8x32xi1>, vector<8x32xf32>
    %cst_106 = arith.constant 0.0628398508 : f32
    %269 = vector.broadcast %cst_106 : f32 to vector<8x32xf32>
    %270 = arith.select %254, %269, %252 : vector<8x32xi1>, vector<8x32xf32>
    %c13_i32 = arith.constant 13 : i32
    %271 = vector.broadcast %c13_i32 : i32 to vector<8x32xi32>
    %272 = arith.cmpi eq, %34, %271 : vector<8x32xi32>
    %c13_107 = arith.constant 13 : index
    %c0_108 = arith.constant 0 : index
    %273 = vector.load %arg2[%c13_107, %c0_108] : memref<17x32xf32, #tpu.memory_space<vmem>>, vector<1x32xf32>
    %274 = vector.shape_cast %273 : vector<1x32xf32> to vector<1x32xf32>
    %275 = vector.broadcast %274 : vector<1x32xf32> to vector<8x32xf32>
    %276 = arith.select %272, %275, %258 : vector<8x32xi1>, vector<8x32xf32>
    %c14 = arith.constant 14 : index
    %c0_109 = arith.constant 0 : index
    %277 = vector.load %arg2[%c14, %c0_109] : memref<17x32xf32, #tpu.memory_space<vmem>>, vector<1x32xf32>
    %278 = vector.shape_cast %277 : vector<1x32xf32> to vector<1x32xf32>
    %279 = vector.broadcast %278 : vector<1x32xf32> to vector<8x32xf32>
    %280 = arith.select %272, %279, %262 : vector<8x32xi1>, vector<8x32xf32>
    %c13_110 = arith.constant 13 : index
    %c0_111 = arith.constant 0 : index
    %281 = vector.load %arg3[%c13_110, %c0_111] : memref<16x32xf32, #tpu.memory_space<vmem>>, vector<1x32xf32>
    %282 = vector.shape_cast %281 : vector<1x32xf32> to vector<1x32xf32>
    %283 = vector.broadcast %282 : vector<1x32xf32> to vector<8x32xf32>
    %284 = arith.select %272, %283, %266 : vector<8x32xi1>, vector<8x32xf32>
    %cst_112 = arith.constant 0.725515544 : f32
    %285 = vector.broadcast %cst_112 : f32 to vector<8x32xf32>
    %286 = arith.select %272, %285, %268 : vector<8x32xi1>, vector<8x32xf32>
    %cst_113 = arith.constant 0.075407818 : f32
    %287 = vector.broadcast %cst_113 : f32 to vector<8x32xf32>
    %288 = arith.select %272, %287, %270 : vector<8x32xi1>, vector<8x32xf32>
    %c14_i32 = arith.constant 14 : i32
    %289 = vector.broadcast %c14_i32 : i32 to vector<8x32xi32>
    %290 = arith.cmpi eq, %34, %289 : vector<8x32xi32>
    %c14_114 = arith.constant 14 : index
    %c0_115 = arith.constant 0 : index
    %291 = vector.load %arg2[%c14_114, %c0_115] : memref<17x32xf32, #tpu.memory_space<vmem>>, vector<1x32xf32>
    %292 = vector.shape_cast %291 : vector<1x32xf32> to vector<1x32xf32>
    %293 = vector.broadcast %292 : vector<1x32xf32> to vector<8x32xf32>
    %294 = arith.select %290, %293, %276 : vector<8x32xi1>, vector<8x32xf32>
    %c15 = arith.constant 15 : index
    %c0_116 = arith.constant 0 : index
    %295 = vector.load %arg2[%c15, %c0_116] : memref<17x32xf32, #tpu.memory_space<vmem>>, vector<1x32xf32>
    %296 = vector.shape_cast %295 : vector<1x32xf32> to vector<1x32xf32>
    %297 = vector.broadcast %296 : vector<1x32xf32> to vector<8x32xf32>
    %298 = arith.select %290, %297, %280 : vector<8x32xi1>, vector<8x32xf32>
    %c14_117 = arith.constant 14 : index
    %c0_118 = arith.constant 0 : index
    %299 = vector.load %arg3[%c14_117, %c0_118] : memref<16x32xf32, #tpu.memory_space<vmem>>, vector<1x32xf32>
    %300 = vector.shape_cast %299 : vector<1x32xf32> to vector<1x32xf32>
    %301 = vector.broadcast %300 : vector<1x32xf32> to vector<8x32xf32>
    %302 = arith.select %290, %301, %284 : vector<8x32xi1>, vector<8x32xf32>
    %cst_119 = arith.constant 0.800923347 : f32
    %303 = vector.broadcast %cst_119 : f32 to vector<8x32xf32>
    %304 = arith.select %290, %303, %286 : vector<8x32xi1>, vector<8x32xf32>
    %cst_120 = arith.constant 0.09048938 : f32
    %305 = vector.broadcast %cst_120 : f32 to vector<8x32xf32>
    %306 = arith.select %290, %305, %288 : vector<8x32xi1>, vector<8x32xf32>
    %c15_i32 = arith.constant 15 : i32
    %307 = vector.broadcast %c15_i32 : i32 to vector<8x32xi32>
    %308 = arith.cmpi eq, %34, %307 : vector<8x32xi32>
    %c15_121 = arith.constant 15 : index
    %c0_122 = arith.constant 0 : index
    %309 = vector.load %arg2[%c15_121, %c0_122] : memref<17x32xf32, #tpu.memory_space<vmem>>, vector<1x32xf32>
    %310 = vector.shape_cast %309 : vector<1x32xf32> to vector<1x32xf32>
    %311 = vector.broadcast %310 : vector<1x32xf32> to vector<8x32xf32>
    %312 = arith.select %308, %311, %294 : vector<8x32xi1>, vector<8x32xf32>
    %c16 = arith.constant 16 : index
    %c0_123 = arith.constant 0 : index
    %313 = vector.load %arg2[%c16, %c0_123] : memref<17x32xf32, #tpu.memory_space<vmem>>, vector<1x32xf32>
    %314 = vector.shape_cast %313 : vector<1x32xf32> to vector<1x32xf32>
    %315 = vector.broadcast %314 : vector<1x32xf32> to vector<8x32xf32>
    %316 = arith.select %308, %315, %298 : vector<8x32xi1>, vector<8x32xf32>
    %c15_124 = arith.constant 15 : index
    %c0_125 = arith.constant 0 : index
    %317 = vector.load %arg3[%c15_124, %c0_125] : memref<16x32xf32, #tpu.memory_space<vmem>>, vector<1x32xf32>
    %318 = vector.shape_cast %317 : vector<1x32xf32> to vector<1x32xf32>
    %319 = vector.broadcast %318 : vector<1x32xf32> to vector<8x32xf32>
    %320 = arith.select %308, %319, %302 : vector<8x32xi1>, vector<8x32xf32>
    %cst_126 = arith.constant 0.891412735 : f32
    %321 = vector.broadcast %cst_126 : f32 to vector<8x32xf32>
    %322 = arith.select %308, %321, %304 : vector<8x32xi1>, vector<8x32xf32>
    %cst_127 = arith.constant 0.108587258 : f32
    %323 = vector.broadcast %cst_127 : f32 to vector<8x32xf32>
    %324 = arith.select %308, %323, %306 : vector<8x32xi1>, vector<8x32xf32>
    %325 = arith.subf %4, %322 : vector<8x32xf32>
    %326 = arith.subf %316, %312 : vector<8x32xf32>
    %327 = arith.divf %326, %324 : vector<8x32xf32>
    %cst_128 = arith.constant 5.000000e-01 : f32
    %328 = vector.broadcast %cst_128 : f32 to vector<8x32xf32>
    %329 = arith.mulf %328, %325 : vector<8x32xf32>
    %330 = arith.mulf %329, %325 : vector<8x32xf32>
    %331 = arith.mulf %330, %327 : vector<8x32xf32>
    %332 = arith.addf %320, %331 : vector<8x32xf32>
    %333 = arith.mulf %325, %312 : vector<8x32xf32>
    %334 = arith.addf %332, %333 : vector<8x32xf32>
    %335 = arith.select %29, %334, %4 : vector<8x32xi1>, vector<8x32xf32>
    %336 = arith.mulf %325, %327 : vector<8x32xf32>
    %337 = arith.addf %336, %312 : vector<8x32xf32>
    %cst_129 = arith.constant 1.000000e+00 : f32
    %338 = vector.broadcast %cst_129 : f32 to vector<8x32xf32>
    %339 = arith.select %29, %337, %338 : vector<8x32xi1>, vector<8x32xf32>
    %cst_130 = arith.constant 1.000000e+02 : f32
    %340 = vector.broadcast %cst_130 : f32 to vector<8x32xf32>
    %341 = arith.mulf %335, %340 : vector<8x32xf32>
    %cst_131 = arith.constant 5.000000e+01 : f32
    %342 = vector.broadcast %cst_131 : f32 to vector<8x32xf32>
    %343 = arith.subf %341, %342 : vector<8x32xf32>
    %c0_132 = arith.constant 0 : index
    %c0_133 = arith.constant 0 : index
    %344 = vector.load %arg4[%c0_132, %c0_133] : memref<8x32xf32, #tpu.memory_space<vmem>>, vector<8x32xf32>
    tpu.vector_store %arg4[%c0_132, %c0_133], %343 {strides = array<i32>} : memref<8x32xf32, #tpu.memory_space<vmem>>, vector<8x32xf32>,
    %345 = math.log %339 : vector<8x32xf32>
    %cst_134 = arith.constant dense<0.000000e+00> : vector<8xf32>
    %346 = vector.multi_reduction <add>, %345, %cst_134 [1] : vector<8x32xf32> to vector<8xf32>
    %347 = vector.shape_cast %346 : vector<8xf32> to vector<8x1xf32>
    %c0_135 = arith.constant 0 : index
    %c0_136 = arith.constant 0 : index
    %348 = vector.load %arg5[%c0_135, %c0_136] : memref<8x1xf32, #tpu.memory_space<vmem>>, vector<8x1xf32>
    tpu.vector_store %arg5[%c0_135, %c0_136], %347 {strides = array<i32>} : memref<8x1xf32, #tpu.memory_space<vmem>>, vector<8x1xf32>,
    return
  }
  func.func @transform_0(%arg0: i32) -> (i32, i32) {
    %c0_i32 = arith.constant 0 : i32
    %c0_i32_0 = arith.constant 0 : i32
    return %arg0, %c0_i32 : i32, i32
  }
  func.func @transform_1(%arg0: i32) -> (i32, i32) {
    %c0_i32 = arith.constant 0 : i32
    %c0_i32_0 = arith.constant 0 : i32
    %c0_i32_1 = arith.constant 0 : i32
    return %c0_i32, %c0_i32_0 : i32, i32
  }
  func.func @transform_2(%arg0: i32) -> (i32, i32) {
    %c0_i32 = arith.constant 0 : i32
    %c0_i32_0 = arith.constant 0 : i32
    %c0_i32_1 = arith.constant 0 : i32
    return %c0_i32, %c0_i32_0 : i32, i32
  }
  func.func @transform_3(%arg0: i32) -> (i32, i32) {
    %c0_i32 = arith.constant 0 : i32
    %c0_i32_0 = arith.constant 0 : i32
    return %arg0, %c0_i32 : i32, i32
  }
  func.func @transform_4(%arg0: i32) -> (i32, i32) {
    %c0_i32 = arith.constant 0 : i32
    %c0_i32_0 = arith.constant 0 : i32
    return %arg0, %c0_i32 : i32, i32
  }
}

</mosaic_0001>

<bundles_post_ra>
// kernel: tpu_custom_call.1
= control target key start
LH: loop header
LB: loop body
LE: loop exit
PB: predicated region body
PF: predicated region fallthrough
CT: control target
= control target key end

     0   :  { %10 = vsyncpa [#allocation3], 0  ;;  %s815_s0 = inlined_call_operand.hbm [shape: f32[8,32], index: 0, kind: input, shape index: {}]   ;;  %s816_s1 = inlined_call_operand.hbm [shape: f32[17,32], index: 1, kind: input, shape index: {}]   ;;  %s817_s2 = inlined_call_operand.hbm [shape: f32[16,32], index: 2, kind: input, shape index: {}]   ;;  %s818_s3 = inlined_call_operand.hbm [shape: f32[8,32], index: 3, kind: output, shape index: {0}]   ;;  %s819_s4 = inlined_call_operand.vmem [shape: f32[8,1], index: 4, kind: output, shape index: {1}]  }
   0x1   :  { %11 = vsyncpa [#allocation6], 0 }
   0x2   :  { %12 = vsyncpa [#allocation4], 0  ;;  %s529_s15 = smov [#allocation5]   ;;  %s435_s19 = scalar_lea.hbm %s816_s1, 384 }
   0x3   :  { %s28_s16 = sshll.u32 %s529_s15, 4  ;;  %p436_p0 = scmp.ne.s32.totalorder %s816_s1, %s435_s19  ;;  %s29_s16 = int_to_ptr.vmem [resolvable:$true] %s28_s16 }
   0x4   :  { %p439_p1 = scmp.lt.u32.totalorder %s435_s19, %s816_s1 }
   0x6   :  { %p441_p2 = pnand %p439_p1, %p436_p0 }
   0x8   :  { %444 = shalt.err (!%p441_p2)
}
   0x9   :  { %s445_s24 = scalar_lea.vmem %s29_s16, 384  ;;  %p450_p4 = scmp.lt.s32.totalorder %s29_s16, %s29_s16 }
   0xa   :  { %p446_p3 = scmp.ne.s32.totalorder %s29_s16, %s445_s24  ;;  %p451_p5 = scmp.lt.s32.totalorder %s445_s24, %s445_s24 }
   0xc   :  { %p452_p6 = por %p451_p5, %p450_p4 }
   0xe   :  { %p453_p7 = pnand %p452_p6, %p446_p3 }
  0x10   :  { %456 = shalt.err (!%p453_p7)
}
  0x11   :  { %s530_s25 = smov 128   ;;  %s531_s26 = smov 8  }
  0x12   :  { %34 = dma.hbm_to_vmem [thread:$0]  %s816_s1, 384, %s29_s16, [#allocation6], %s530_s25, %s530_s25, %s531_s26  }
  0x13   :  { %s532_s29 = smov [#allocation2]   ;;  %s533_s5 = smov [#allocation7]  }
  0x14   :  { %s19_s30 = sshll.u32 %s532_s29, 4  ;;  %s40_s6 = sshll.u32 %s533_s5, 4  ;;  %s20_s30 = int_to_ptr.vmem [resolvable:$true] %s19_s30  ;;  %s41_s6 = int_to_ptr.vmem [resolvable:$true] %s40_s6 }
  0x15   :  { %s457_s9 = scalar_lea.hbm %s815_s0, 128 }
  0x16   :  { %p458_p8 = scmp.ne.s32.totalorder %s815_s0, %s457_s9  ;;  %p461_p9 = scmp.lt.u32.totalorder %s457_s9, %s815_s0 }
  0x18   :  { %p463_p10 = pnand %p461_p9, %p458_p8 }
  0x1a   :  { %466 = shalt.err (!%p463_p10)
}
  0x1b   :  { %s467_s1 = scalar_lea.vmem %s20_s30, 128  ;;  %p472_p12 = scmp.lt.s32.totalorder %s20_s30, %s20_s30 }
  0x1c   :  { %p468_p11 = scmp.ne.s32.totalorder %s20_s30, %s467_s1  ;;  %p473_p13 = scmp.lt.s32.totalorder %s467_s1, %s467_s1 }
  0x1e   :  { %p474_p0 = por %p473_p13, %p472_p12 }
  0x20   :  { %p475_p1 = pnand %p474_p0, %p468_p11 }
  0x22   :  { %478 = shalt.err (!%p475_p1)
}
  0x23   :  { %22 = dma.hbm_to_vmem [thread:$0]  %s815_s0, 128, %s20_s30, [#allocation3]  }
  0x24   :  { %s479_s18 = scalar_lea.hbm %s817_s2, 256 }
  0x25   :  { %p480_p2 = scmp.ne.s32.totalorder %s817_s2, %s479_s18  ;;  %p483_p3 = scmp.lt.u32.totalorder %s479_s18, %s817_s2 }
  0x27   :  { %p485_p4 = pnand %p483_p3, %p480_p2 }
  0x29   :  { %488 = shalt.err (!%p485_p4)
}
  0x2a   :  { %s489_s23 = scalar_lea.vmem %s41_s6, 256  ;;  %p494_p6 = scmp.lt.s32.totalorder %s41_s6, %s41_s6 }
  0x2b   :  { %p490_p5 = scmp.ne.s32.totalorder %s41_s6, %s489_s23  ;;  %p495_p7 = scmp.lt.s32.totalorder %s489_s23, %s489_s23 }
  0x2d   :  { %p496_p8 = por %p495_p7, %p494_p6 }
  0x2f   :  { %p497_p9 = pnand %p496_p8, %p490_p5 }
  0x31   :  { %500 = shalt.err (!%p497_p9)
}
  0x32   :  { %46 = dma.hbm_to_vmem [thread:$0]  %s817_s2, 256, %s41_s6, [#allocation6], %s530_s25, %s530_s25, %s531_s26  }
  0x33   :  { %523 = dma.done.wait [#allocation3], 128  }
  0x34   :  { %524 = vsyncadd [#allocation3], 4294967168 }
  0x35   :  { %525 = dma.done.wait [#allocation6], 640  }
  0x36   :  { %526 = vsyncadd [#allocation6], 4294966656  ;;  %v56_v0 = vld [vmem:[#allocation2] sm:$0xff]  ;;  %v385_v19 = vld [vmem:[#allocation5] ss:$0 sm:$0xff]  ;;  %v534_v26 = vmov 1.0  }
  0x37   :  { %v57_v1 = vadd.f32 50.0, %v56_v0  ;;  %v386_v20 = vld [vmem:[#allocation5 + $0x1] ss:$0 sm:$0xff]  ;;  %v388_v21 = vld [vmem:[#allocation5 + $0x2] ss:$0 sm:$0xff]  ;;  %v535_v30 = vmov 0.0  }
  0x38   :  { %v390_v22 = vld [vmem:[#allocation5 + $0x3] ss:$0 sm:$0xff]  ;;  %v392_v23 = vld [vmem:[#allocation5 + $0x4] ss:$0 sm:$0xff]  ;;  %v394_v35 = vld [vmem:[#allocation5 + $0x5] ss:$0 sm:$0xff] }
  0x39   :  { %v604_v2 = vmul.f32 0.01, %v57_v1  ;;  %v396_v40 = vld [vmem:[#allocation5 + $0x6] ss:$0 sm:$0xff]  ;;  %v398_v47 = vld [vmem:[#allocation5 + $0x7] ss:$0 sm:$0xff] }
  0x3a   :  { %v400_v52 = vld [vmem:[#allocation5 + $0x8] ss:$0 sm:$0xff]  ;;  %v402_v53 = vld [vmem:[#allocation5 + $0x9] ss:$0 sm:$0xff]  ;;  %v404_v58 = vld [vmem:[#allocation5 + $0xa] ss:$0 sm:$0xff] }
  0x3b   :  { %v383_v3 = vadd.f32 -0.5, %v604_v2  ;;  %s536_s2 = smov [#allocation8]  }
  0x3c   :  { %s369_s25 = sshll.u32 %s536_s2, 4  ;;  %s370_s25 = int_to_ptr.vmem [resolvable:$true] %s369_s25 }
  0x3d   :  { %v60_v4 = vand.u32 2147483647, %v383_v3  ;;  %vm67_vm0 = vcmp.ge.f32.partialorder %v383_v3, 0.0  ;;  %s501_s26 = scalar_lea.vmem %s370_s25, 128  ;;  %p506_p11 = scmp.lt.s32.totalorder %s370_s25, %s370_s25 }
  0x3e   :  { %p502_p10 = scmp.ne.s32.totalorder %s370_s25, %s501_s26  ;;  %p507_p12 = scmp.lt.s32.totalorder %s501_s26, %s501_s26 }
  0x3f   :  { %v61_v5 = vmul.f32 6.5996337, %v60_v4  ;;  %v406_v4 = vld [vmem:[#allocation5 + $0xb] ss:$0 sm:$0xff] }
  0x40   :  { %p508_p13 = por %p507_p12, %p506_p11 }
  0x41   :  { %v62_v6 = vadd.f32 1.0, %v61_v5 }
  0x42   :  { %p509_p0 = pnand %p508_p13, %p502_p10 }
  0x43   :  { %429 = vlog2.f32 %v62_v6 }
  0x4d   :  { %v430_v7 = vpop.eup %429 }
  0x4e   :  { %v64_v8 = vmul.f32 0.6931472, %v430_v7 }
  0x50   :  { %v65_v9 = vmul.f32 5.484815, %v64_v8 }
  0x52   :  { %v66_v10 = vfloor.f32 %v65_v9  ;;  %v408_v9 = vld [vmem:[#allocation5 + $0xc] ss:$0 sm:$0xff] }
  0x54   :  { %v68_v11 = vadd.f32 8.0, %v66_v10  ;;  %v69_v12 = vsub.f32 8.0, %v66_v10  ;;  %v410_v10 = vld [vmem:[#allocation5 + $0xd] ss:$0 sm:$0xff] }
  0x56   :  { %v384_v13 = vadd.f32 -1.0, %v69_v12 }
  0x58   :  { %v607_v14 = vsel %vm67_vm0, %v68_v11, %v384_v13 }
  0x59   :  { %v75_v15 = vmax.f32 %v607_v14, 0.0 }
  0x5b   :  { %v76_v16 = vmin.f32 %v75_v15, 15.0 }
  0x5d   :  { %v419_v17 = vtrunc.f32 %v76_v16 }
  0x5f   :  { %v610_v18 = vcvt.f32.s32 %v419_v17 }
  0x61   :  { %vm78_vm1 = vcmp.eq.s32.totalorder %v610_v18, 0  ;;  %vm98_vm2 = vcmp.eq.s32.totalorder %v610_v18, 1  ;;  %vm114_vm3 = vcmp.eq.s32.totalorder %v610_v18, 2  ;;  %vm130_vm4 = vcmp.eq.s32.totalorder %v610_v18, 3 }
  0x62   :  { %v84_v24 = vsel %vm78_vm1, %v385_v19, 0.0  ;;  %v90_v25 = vsel %vm78_vm1, %v386_v20, 0.0  ;;  %v97_v27 = vsel %vm78_vm1, 0.10858726, %v534_v26  ;;  %v112_v31 = vsel %vm98_vm2, 0.10858726, %v535_v30 }
  0x63   :  { %v99_v28 = vsel %vm98_vm2, %v386_v20, %v84_v24  ;;  %v105_v29 = vsel %vm98_vm2, %v388_v21, %v90_v25  ;;  %v113_v32 = vsel %vm98_vm2, 0.09048938, %v97_v27  ;;  %v128_v36 = vsel %vm114_vm3, 0.19907664, %v112_v31  ;;  %v412_v24 = vld [vmem:[#allocation5 + $0xe] ss:$0 sm:$0xff] }
  0x64   :  { %v115_v33 = vsel %vm114_vm3, %v388_v21, %v99_v28  ;;  %v121_v34 = vsel %vm114_vm3, %v390_v22, %v105_v29  ;;  %v129_v37 = vsel %vm114_vm3, 0.07540782, %v113_v32  ;;  %v144_v41 = vsel %vm130_vm4, 0.27448446, %v128_v36  ;;  %v414_v29 = vld [vmem:[#allocation5 + $0xf] ss:$0 sm:$0xff] }
  0x65   :  { %v131_v38 = vsel %vm130_vm4, %v390_v22, %v115_v33  ;;  %v137_v39 = vsel %vm130_vm4, %v392_v23, %v121_v34  ;;  %v145_v42 = vsel %vm130_vm4, 0.06283985, %v129_v37  ;;  %vm146_vm5 = vcmp.eq.s32.totalorder %v610_v18, 4 }
  0x66   :  { %vm162_vm6 = vcmp.eq.s32.totalorder %v610_v18, 5  ;;  %v147_v43 = vsel %vm146_vm5, %v392_v23, %v131_v38  ;;  %v153_v44 = vsel %vm146_vm5, %v394_v35, %v137_v39  ;;  %v160_v45 = vsel %vm146_vm5, 0.33732432, %v144_v41 }
  0x67   :  { %v161_v46 = vsel %vm146_vm5, 0.05236654, %v145_v42  ;;  %v163_v48 = vsel %vm162_vm6, %v394_v35, %v147_v43  ;;  %v169_v49 = vsel %vm162_vm6, %v396_v40, %v153_v44  ;;  %v176_v50 = vsel %vm162_vm6, 0.38969085, %v160_v45  ;;  %v416_v35 = vld [vmem:[#allocation5 + $0x10] ss:$0 sm:$0xff] }
  0x68   :  { %v177_v51 = vsel %vm162_vm6, 0.043638784, %v161_v46  ;;  %vm178_vm7 = vcmp.eq.s32.totalorder %v610_v18, 6  ;;  %vm194_vm8 = vcmp.eq.s32.totalorder %v610_v18, 7  ;;  %vm210_vm9 = vcmp.eq.s32.totalorder %v610_v18, 8 }
  0x69   :  { %vm226_vm10 = vcmp.eq.s32.totalorder %v610_v18, 9  ;;  %v179_v54 = vsel %vm178_vm7, %v396_v40, %v163_v48  ;;  %v185_v55 = vsel %vm178_vm7, %v398_v47, %v169_v49  ;;  %v192_v56 = vsel %vm178_vm7, 0.43332964, %v176_v50  ;;  %v387_v43 = vld [vmem:[#allocation7] ss:$0 sm:$0xff] }
  0x6a   :  { %v193_v57 = vsel %vm178_vm7, 0.036365654, %v177_v51  ;;  %v195_v59 = vsel %vm194_vm8, %v398_v47, %v179_v54  ;;  %v201_v60 = vsel %vm194_vm8, %v400_v52, %v185_v55  ;;  %v208_v61 = vsel %vm194_vm8, 0.4696953, %v192_v56  ;;  %v389_v48 = vld [vmem:[#allocation7 + $0x1] ss:$0 sm:$0xff] }
  0x6b   :  { %v209_v62 = vsel %vm194_vm8, 0.030304711, %v193_v57  ;;  %v211_v63 = vsel %vm210_vm9, %v400_v52, %v195_v59  ;;  %v217_v0 = vsel %vm210_vm9, %v402_v53, %v201_v60  ;;  %v224_v1 = vsel %vm210_vm9, 0.5, %v208_v61  ;;  %v391_v51 = vld [vmem:[#allocation7 + $0x2] ss:$0 sm:$0xff] }
  0x6c   :  { %v225_v3 = vsel %vm210_vm9, 0.030304711, %v209_v62  ;;  %v227_v5 = vsel %vm226_vm10, %v402_v53, %v211_v63  ;;  %v233_v6 = vsel %vm226_vm10, %v404_v58, %v217_v0  ;;  %v240_v7 = vsel %vm226_vm10, 0.53030473, %v224_v1  ;;  %v393_v53 = vld [vmem:[#allocation7 + $0x3] ss:$0 sm:$0xff] }
  0x6d   :  { %v241_v8 = vsel %vm226_vm10, 0.036365654, %v225_v3  ;;  %vm242_vm11 = vcmp.eq.s32.totalorder %v610_v18, 10  ;;  %vm258_vm12 = vcmp.eq.s32.totalorder %v610_v18, 11  ;;  %vm821_vm13 = vcmp.eq.s32.totalorder %v610_v18, 12 }
  0x6e   :  { %vm820_vm14 = vcmp.eq.s32.totalorder %v610_v18, 13  ;;  %v243_v11 = vsel %vm242_vm11, %v404_v58, %v227_v5  ;;  %v249_v12 = vsel %vm242_vm11, %v406_v4, %v233_v6  ;;  %v256_v13 = vsel %vm242_vm11, 0.56667036, %v240_v7  ;;  %v395_v55 = vld [vmem:[#allocation7 + $0x4] ss:$0 sm:$0xff] }
  0x6f   :  { %v257_v15 = vsel %vm242_vm11, 0.043638784, %v241_v8  ;;  %v259_v16 = vsel %vm258_vm12, %v406_v4, %v243_v11  ;;  %v265_v17 = vsel %vm258_vm12, %v408_v9, %v249_v12  ;;  %v272_v19 = vsel %vm258_vm12, 0.6103091, %v256_v13  ;;  %v397_v58 = vld [vmem:[#allocation7 + $0x5] ss:$0 sm:$0xff] }
  0x70   :  { %v273_v20 = vsel %vm258_vm12, 0.05236654, %v257_v15  ;;  %v275_v21 = vsel %vm821_vm13, %v408_v9, %v259_v16  ;;  %v281_v22 = vsel %vm821_vm13, %v410_v10, %v265_v17  ;;  %v288_v26 = vsel %vm821_vm13, 0.6626757, %v272_v19  ;;  %v399_v60 = vld [vmem:[#allocation7 + $0x6] ss:$0 sm:$0xff] }
  0x71   :  { %v289_v23 = vsel %vm821_vm13, 0.06283985, %v273_v20  ;;  %vm822_vm15 = vcmp.eq.s32.totalorder %v610_v18, 14  ;;  %vm322_vm0 = vcmp.eq.s32.totalorder %v610_v18, 15  ;;  %v291_v27 = vsel %vm820_vm14, %v410_v10, %v275_v21  ;;  %v401_v62 = vld [vmem:[#allocation7 + $0x7] ss:$0 sm:$0xff] }
  0x72   :  { %v305_v25 = vsel %vm820_vm14, 0.07540782, %v289_v23  ;;  %v297_v28 = vsel %vm820_vm14, %v412_v24, %v281_v22  ;;  %v304_v32 = vsel %vm820_vm14, 0.72551554, %v288_v26  ;;  %v307_v33 = vsel %vm822_vm15, %v412_v24, %v291_v27  ;;  %v403_v0 = vld [vmem:[#allocation7 + $0x8] ss:$0 sm:$0xff] }
  0x73   :  { %v321_v30 = vsel %vm822_vm15, 0.09048938, %v305_v25  ;;  %v313_v34 = vsel %vm822_vm15, %v414_v29, %v297_v28  ;;  %v320_v36 = vsel %vm822_vm15, 0.80092335, %v304_v32  ;;  %v323_v37 = vsel %vm322_vm0, %v414_v29, %v307_v33  ;;  %v405_v5 = vld [vmem:[#allocation7 + $0x9] ss:$0 sm:$0xff] }
  0x74   :  { %v337_v31 = vsel %vm322_vm0, 0.10858726, %v321_v30  ;;  %v329_v38 = vsel %vm322_vm0, %v416_v35, %v313_v34  ;;  %v336_v39 = vsel %vm322_vm0, 0.89141273, %v320_v36  ;;  %vm72_vm14 = vcmp.ge.f32.partialorder %v607_v14, 0.0 }
  0x75   :  { %431 = vrcp.f32 %v337_v31  ;;  %v339_v40 = vsub.f32 %v329_v38, %v323_v37  ;;  %v338_v41 = vsub.f32 %v604_v2, %v336_v39  ;;  %vm73_vm13 = vcmp.le.f32.partialorder %v607_v14, 15.0  ;;  %v407_v8 = vld [vmem:[#allocation7 + $0xa] ss:$0 sm:$0xff]  ;;  %v409_v10 = vld [vmem:[#allocation7 + $0xb] ss:$0 sm:$0xff] }
  0x76   :  { %vm757_vm15 = vmand %vm72_vm14, %vm73_vm13  ;;  %v96_v47 = vsel %vm78_vm1, %v387_v43, 0.0  ;;  %vm354_vm1 = vcmask 261120   ;;  %v411_v13 = vld [vmem:[#allocation7 + $0xc] ss:$0 sm:$0xff]  ;;  %v413_v17 = vld [vmem:[#allocation7 + $0xd] ss:$0 sm:$0xff] }
  0x77   :  { %v111_v50 = vsel %vm98_vm2, %v389_v48, %v96_v47  ;;  %v342_v56 = vmul.f32 0.5, %v338_v41  ;;  %vm825_vm2 = vcmp.eq.s32.totalorder %v610_v18, 12  ;;  %v415_v20 = vld [vmem:[#allocation7 + $0xe] ss:$0 sm:$0xff]  ;;  %v346_v21 = vmul.f32 %v338_v41, %v323_v37  ;;  %v417_v23 = vld [vmem:[#allocation7 + $0xf] ss:$0 sm:$0xff] }
  0x78   :  { %v127_v14 = vsel %vm114_vm3, %v391_v51, %v111_v50  ;;  %vm826_vm3 = vcmp.eq.s32.totalorder %v610_v18, 13 }
  0x79   :  { %v143_v54 = vsel %vm130_vm4, %v393_v53, %v127_v14  ;;  %v343_v3 = vmul.f32 %v342_v56, %v338_v41  ;;  %vm827_vm4 = vcmp.eq.s32.totalorder %v610_v18, 14 }
  0x7a   :  { %v159_v57 = vsel %vm146_vm5, %v395_v55, %v143_v54 }
  0x7b   :  { %v175_v59 = vsel %vm162_vm6, %v397_v58, %v159_v57 }
  0x7c   :  { %v191_v61 = vsel %vm178_vm7, %v399_v60, %v175_v59 }
  0x7d   :  { %v207_v63 = vsel %vm194_vm8, %v401_v62, %v191_v61 }
  0x7e   :  { %v223_v4 = vsel %vm210_vm9, %v403_v0, %v207_v63 }
  0x7f   :  { %v432_v42 = vpop.eup %431  ;;  %v239_v7 = vsel %vm226_vm10, %v405_v5, %v223_v4 }
  0x80   :  { %v341_v44 = vmul.f32 %v432_v42, %v339_v40  ;;  %v255_v9 = vsel %vm242_vm11, %v407_v8, %v239_v7 }
  0x81   :  { %v271_v12 = vsel %vm258_vm12, %v409_v10, %v255_v9 }
  0x82   :  { %v349_v45 = vmul.f32 %v341_v44, %v338_v41  ;;  %v344_v15 = vmul.f32 %v343_v3, %v341_v44  ;;  %v287_v16 = vsel %vm825_vm2, %v411_v13, %v271_v12 }
  0x83   :  { %v303_v19 = vsel %vm826_vm3, %v413_v17, %v287_v16 }
  0x84   :  { %v350_v49 = vadd.f32 %v349_v45, %v323_v37  ;;  %v319_v22 = vsel %vm827_vm4, %v415_v20, %v303_v19 }
  0x85   :  { %v335_v24 = vsel %vm322_vm0, %v417_v23, %v319_v22 }
  0x86   :  { %v351_v52 = vsel %vm757_vm15, %v350_v49, 1.0  ;;  %v345_v25 = vadd.f32 %v344_v15, %v335_v24 }
  0x87   :  { %433 = vlog2.f32 %v351_v52 }
  0x88   :  { %v347_v26 = vadd.f32 %v346_v21, %v345_v25 }
  0x8a   :  { %v348_v27 = vsel %vm757_vm15, %v347_v26, %v604_v2 }
  0x8b   :  { %v352_v28 = vmul.f32 100.0, %v348_v27 }
  0x8d   :  { %v418_v29 = vadd.f32 -50.0, %v352_v28 }
  0x8f   :  { %355 = vst.msk [vmem:[#allocation8] sm:$0xff] %vm354_vm1, %v418_v29 }
  0x91   :  { %v434_v1 = vpop.eup %433 }
  0x92   :  { %v357_v6 = vmul.f32 0.6931472, %v434_v1 }
  0x94   :  { %v358_v11 = vsel %vm354_vm1, %v357_v6, 0.0 }
  0x95   :  { %359 = vadd.xlane.f32.xlu0 %v358_v11 }
  0x96   :  { %512 = shalt.err (!%p509_p0)
}
  0x97   :  { %s513_s29 = scalar_lea.hbm %s818_s3, 128 }
  0x98   :  { %p514_p1 = scmp.ne.s32.totalorder %s818_s3, %s513_s29  ;;  %p517_p2 = scmp.lt.u32.totalorder %s513_s29, %s818_s3 }
  0x9a   :  { %p519_p3 = pnand %p517_p2, %p514_p1 }
  0x9c   :  { %522 = shalt.err (!%p519_p3)
}
  0x9d   :  { %372 = dma.vmem_to_hbm [thread:$0]  %s370_s25, 128, %s818_s3, [#allocation4]   ;;  %vm361_vm5 = vcmask 7168  }
 0x122   :  { %v360_v2 = vpop.xlane.xlu0 %359 }
 0x123   :  { %362 = vst.msk [vmem:[%s819_s4] sm:$0xff] %vm361_vm5, %v360_v2 }
 0x124   :  { %527 = dma.done.wait [#allocation4], 128  }
 0x125   :  { %528 = vsyncadd [#allocation4], 4294967168 }
 0x126   :  { %380 = vsyncpa [#allocation3], 1 }
 0x127   :  { %381 = vsyncpa [#allocation6], 1 }
 0x128   :  { %382 = vsyncpa [#allocation4], 1 }

</bundles_post_ra>
